<compile_context>
chip_gen: v5e
topology: v5e:2x2
jax: 0.10.0
libtpu: 0.0.40
codegen_flags: <defaults>
</compile_context>

<pallas_src>
import functools

import jax
import jax.numpy as jnp
from jax.experimental import pallas as pl
from jax.experimental.pallas import tpu as pltpu

# --- LIFParameters defaults (norse) ------------------------------------------
TAU_SYN_INV = 200.0
TAU_MEM_INV = 100.0
V_LEAK = 0.0
V_TH = 1.0
V_RESET = 0.0
DT = 0.001
ALPHA = DT * TAU_MEM_INV            # membrane integration factor
SYN_DECAY = 1.0 - DT * TAU_SYN_INV  # synaptic current decay factor
LEAK_BIAS = ALPHA * V_LEAK          # constant leak drive (0.0 for defaults)


def _round_up(x, m):
    return (x + m - 1) // m * m


def _pad_to(a, shape):
    return jnp.pad(a, [(0, s - d) for d, s in zip(a.shape, shape)])


def lif_mc_seq_kernel(
    x_ref,       # [1, Bp, Np]    input spikes for this timestep (streamed)
    z0_ref,      # [Bp, Hp]       initial recurrent spikes      (resident)
    v0_ref,      # [Bp, Hp]       initial membrane voltage      (resident)
    i0_ref,      # [Bp, Hp]       initial synaptic current      (resident)
    w_cat_ref,   # [Np+Hp, Hp]    [W_in.T ; W_rec.T] stacked, zero-padded
    g_ref,       # [Hp, Hp]       alpha*g.T + (1-alpha)*I, zero-padded
    z_seq_ref,   # [1, Bp, Hp]    per-step output spikes
    z_out_ref,   # [Bp, Hp]       final spike state   (VMEM-resident carry)
    v_out_ref,   # [Bp, Hp]       final voltage state (VMEM-resident carry)
    i_out_ref,   # [Bp, Hp]       final current state (VMEM-resident carry)
    xz_buf,      # [Bp, Np+Hp]    scratch: packed [x_t | z_t] for fused matmul
    *,
    n_pad: int,  # static padded input width Np
    h_pad: int,  # static padded hidden width Hp
):
    t = pl.program_id(0)

    # Load the initial state into the VMEM-resident state blocks at t == 0.
    @pl.when(t == 0)
    def _():
        z_out_ref[...] = z0_ref[...]
        v_out_ref[...] = v0_ref[...]
        i_out_ref[...] = i0_ref[...]

    z = z_out_ref[...]
    v = v_out_ref[...]
    i = i_out_ref[...]

    # Membrane update.  g_ref already contains alpha*g.T + (1-alpha)*I, so the
    # whole leak/coupling term comes out of one MXU dot; only the synaptic
    # drive remains on the VPU.
    v_decayed = (
        jnp.dot(v, g_ref[...], preferred_element_type=jnp.float32) + ALPHA * i
    )
    if LEAK_BIAS != 0.0:  # constant-folded at trace time (0.0 for defaults)
        v_decayed = v_decayed + LEAK_BIAS

    # Spike generation (heaviside forward) + reset via select.
    spike = v_decayed > V_TH
    z_new = spike.astype(z_out_ref.dtype)
    v_new = jnp.where(spike, V_RESET, v_decayed)

    # Fused input + recurrent matmul: [x_t | z_prev] @ [W_in.T ; W_rec.T],
    # plus the folded synaptic decay of the carried current.
    xz_buf[:, :n_pad] = x_ref[0]
    xz_buf[:, n_pad:n_pad + h_pad] = z
    i_new = SYN_DECAY * i + jnp.dot(
        xz_buf[...], w_cat_ref[...], preferred_element_type=jnp.float32
    )

    # Emit this step's spikes and carry the state to the next grid step.
    z_seq_ref[0] = z_new
    z_out_ref[...] = z_new
    v_out_ref[...] = v_new.astype(v_out_ref.dtype)
    i_out_ref[...] = i_new.astype(i_out_ref.dtype)


def lif_mc_sequence(x_seq, z, v, i, input_weights, recurrent_weights, g_coupling):
    """Runs T euler steps of the multi-compartment LIF cell in ONE pallas_call.

    x_seq: [T, B, N_in]; z, v, i: [B, H]
    input_weights: [H, N_in]; recurrent_weights, g_coupling: [H, H]
    Returns (z_seq [T, B, H], (z_T, v_T, i_T)).
    """
    T, B, N_in = x_seq.shape
    H = v.shape[1]
    dtype = x_seq.dtype

    # Sublane / lane alignment (f32: 8 x 128).
    Bp = _round_up(B, 8)
    Hp = _round_up(H, 128)
    Np = _round_up(N_in, 128)
    Kp = Np + Hp

    # --- one-time (per call) weight preparation, outside the time loop -------
    w_cat = jnp.zeros((Kp, Hp), dtype)
    w_cat = w_cat.at[:N_in, :H].set(input_weights.T.astype(dtype))
    w_cat = w_cat.at[Np:Np + H, :H].set(recurrent_weights.T.astype(dtype))
    # Effective coupling: alpha * g.T with (1 - alpha) on the diagonal, so the
    # membrane leak v*(1-alpha) rides along the same MXU pass for free.
    g_eff = jnp.zeros((Hp, Hp), dtype)
    g_eff = g_eff.at[:H, :H].set((ALPHA * g_coupling.T).astype(dtype))
    g_eff = g_eff + (1.0 - ALPHA) * jnp.eye(Hp, dtype=dtype)

    # --- pad activations / state (zero padding is invariant under the step) --
    x_p = _pad_to(x_seq, (T, Bp, Np))
    z_p = _pad_to(z, (Bp, Hp))
    v_p = _pad_to(v, (Bp, Hp))
    i_p = _pad_to(i, (Bp, Hp))

    state_spec = pl.BlockSpec((Bp, Hp), lambda t: (0, 0))
    grid_spec = pltpu.PrefetchScalarGridSpec(
        num_scalar_prefetch=0,
        grid=(T,),
        in_specs=[
            pl.BlockSpec((1, Bp, Np), lambda t: (t, 0, 0)),  # x_t (streamed)
            state_spec,                                      # z0 (resident)
            state_spec,                                      # v0 (resident)
            state_spec,                                      # i0 (resident)
            pl.BlockSpec((Kp, Hp), lambda t: (0, 0)),        # weights (resident)
            pl.BlockSpec((Hp, Hp), lambda t: (0, 0)),        # coupling (resident)
        ],
        out_specs=(
            pl.BlockSpec((1, Bp, Hp), lambda t: (t, 0, 0)),  # per-step spikes
            state_spec,                                      # final z carry
            state_spec,                                      # final v carry
            state_spec,                                      # final i carry
        ),
        scratch_shapes=[pltpu.VMEM((Bp, Kp), dtype)],
    )

    z_seq_p, z_f, v_f, i_f = pl.pallas_call(
        functools.partial(lif_mc_seq_kernel, n_pad=Np, h_pad=Hp),
        out_shape=(
            jax.ShapeDtypeStruct((T, Bp, Hp), dtype),
            jax.ShapeDtypeStruct((Bp, Hp), dtype),
            jax.ShapeDtypeStruct((Bp, Hp), dtype),
            jax.ShapeDtypeStruct((Bp, Hp), dtype),
        ),
        grid_spec=grid_spec,
        compiler_params=pltpu.CompilerParams(
            # Time axis carries state -> sequential.
            dimension_semantics=("arbitrary",),
        ),
    )(x_p, z_p, v_p, i_p, w_cat, g_eff)

    return (
        z_seq_p[:, :B, :H],
        (z_f[:B, :H], v_f[:B, :H], i_f[:B, :H]),
    )


def lif_mc_step(x, z, v, i, input_weights, recurrent_weights, g_coupling):
    """One euler step (the LIFMCCell.forward contract).

    Returns (z_new, (z_new, v_new, i_new)) mirroring (output, LIFState).
    """
    z_seq, state = lif_mc_sequence(
        x[None], z, v, i, input_weights, recurrent_weights, g_coupling
    )
    return z_seq[0], state


def lif_mc_step_ref(x, z, v, i, w_in, w_rec, g):
    """Pure-JAX reference (mirrors the PyTorch / norse code path)."""
    dv = DT * TAU_MEM_INV * ((V_LEAK - v) + i + v @ g.T)
    v_decayed = v + dv
    i_decayed = i - DT * TAU_SYN_INV * i
    z_new = (v_decayed - V_TH > 0.0).astype(v.dtype)
    v_new = (1.0 - z_new) * v_decayed + z_new * V_RESET
    i_new = i_decayed + x @ w_in.T + z @ w_rec.T
    return z_new, v_new, i_new


if __name__ == "__main__":
    batch = 2
    input_size = 16
    hidden_size = 32
    T = 8
    dtype = jnp.float32

    key = jax.random.PRNGKey(0)
    k_win, k_wrec, k_g, k_x, k_v, k_i, k_z = jax.random.split(key, 7)

    # deterministic parameter init (torch.randn(...) / sqrt(fan_in))
    input_weights = (
        jax.random.normal(k_win, (hidden_size, input_size), dtype)
        / jnp.sqrt(jnp.float32(input_size))
    )
    recurrent_weights = (
        jax.random.normal(k_wrec, (hidden_size, hidden_size), dtype)
        / jnp.sqrt(jnp.float32(hidden_size))
    )
    g_coupling = (
        jax.random.normal(k_g, (hidden_size, hidden_size), dtype)
        / jnp.sqrt(jnp.float32(hidden_size))
    )

    # inputs / state (non-zero state so the spike + reset path is exercised)
    x_seq = (jax.random.uniform(k_x, (T, batch, input_size)) > 0.5).astype(dtype)
    v0 = jax.random.normal(k_v, (batch, hidden_size), dtype) + 0.8
    i0 = jax.random.normal(k_i, (batch, hidden_size), dtype) * 0.1
    z0 = (jax.random.uniform(k_z, (batch, hidden_size)) > 0.5).astype(dtype)

    # --- single euler step (the module's forward) -----------------------------
    z_out, (z_s, v_s, i_s) = lif_mc_step(
        x_seq[0], z0, v0, i0, input_weights, recurrent_weights, g_coupling
    )
    jax.block_until_ready((z_out, z_s, v_s, i_s))

    z_r, v_r, i_r = lif_mc_step_ref(
        x_seq[0], z0, v0, i0, input_weights, recurrent_weights, g_coupling
    )
    assert jnp.allclose(z_out, z_r, atol=1e-5), "single-step spike mismatch"
    assert jnp.allclose(v_s, v_r, atol=1e-5), "single-step voltage mismatch"
    assert jnp.allclose(i_s, i_r, atol=1e-5), "single-step current mismatch"

    # --- full sequence in ONE pallas_call (weights stay VMEM-resident) --------
    z_seq, (z_f, v_f, i_f) = lif_mc_sequence(
        x_seq, z0, v0, i0, input_weights, recurrent_weights, g_coupling
    )
    jax.block_until_ready((z_seq, z_f, v_f, i_f))

    z_t, v_t, i_t = z0, v0, i0
    z_seq_ref = []
    for t in range(T):
        z_t, v_t, i_t = lif_mc_step_ref(
            x_seq[t], z_t, v_t, i_t,
            input_weights, recurrent_weights, g_coupling,
        )
        z_seq_ref.append(z_t)
    z_seq_ref = jnp.stack(z_seq_ref)

    assert jnp.allclose(z_seq, z_seq_ref, atol=1e-4), "sequence spike mismatch"
    assert jnp.allclose(z_f, z_t, atol=1e-4), "final spike mismatch"
    assert jnp.allclose(v_f, v_t, atol=1e-4), "final voltage mismatch"
    assert jnp.allclose(i_f, i_t, atol=1e-4), "final current mismatch"

    print("KERNEL_OK")
</pallas_src>

<mosaic_0001>
module attributes {stable_mosaic.version = 11 : i64} {
  func.func @lif_mc_seq_kernel(%arg0: i32, %arg1: memref<1x8x128xf32, #tpu.memory_space<vmem>>, %arg2: memref<8x128xf32, #tpu.memory_space<vmem>>, %arg3: memref<8x128xf32, #tpu.memory_space<vmem>>, %arg4: memref<8x128xf32, #tpu.memory_space<vmem>>, %arg5: memref<256x128xf32, #tpu.memory_space<vmem>>, %arg6: memref<128x128xf32, #tpu.memory_space<vmem>>, %arg7: memref<1x8x128xf32, #tpu.memory_space<vmem>>, %arg8: memref<8x128xf32, #tpu.memory_space<vmem>>, %arg9: memref<8x128xf32, #tpu.memory_space<vmem>>, %arg10: memref<8x128xf32, #tpu.memory_space<vmem>>, %arg11: memref<8x256xf32, #tpu.memory_space<vmem>>) attributes {dimension_semantics = [#tpu.dimension_semantics<arbitrary>], iteration_bounds = array<i64: 1>, scalar_prefetch = 0 : i64, scratch_operands = 1 : i64, tpu.core_type = #tpu.core_type<tc>, window_params = [{transform_indices = @transform_0, window_bounds = array<i64: 1, 8, 128>}, {pipeline_mode = #tpu.pipeline_mode<synchronous>, transform_indices = @transform_1, window_bounds = array<i64: 8, 128>}, {pipeline_mode = #tpu.pipeline_mode<synchronous>, transform_indices = @transform_2, window_bounds = array<i64: 8, 128>}, {pipeline_mode = #tpu.pipeline_mode<synchronous>, transform_indices = @transform_3, window_bounds = array<i64: 8, 128>}, {pipeline_mode = #tpu.pipeline_mode<synchronous>, transform_indices = @transform_4, window_bounds = array<i64: 256, 128>}, {pipeline_mode = #tpu.pipeline_mode<synchronous>, transform_indices = @transform_5, window_bounds = array<i64: 128, 128>}, {transform_indices = @transform_6, window_bounds = array<i64: 1, 8, 128>}, {pipeline_mode = #tpu.pipeline_mode<synchronous>, transform_indices = @transform_7, window_bounds = array<i64: 8, 128>}, {pipeline_mode = #tpu.pipeline_mode<synchronous>, transform_indices = @transform_8, window_bounds = array<i64: 8, 128>}, {pipeline_mode = #tpu.pipeline_mode<synchronous>, transform_indices = @transform_9, window_bounds = array<i64: 8, 128>}]} {
    %c0_i32 = arith.constant 0 : i32
    %0 = arith.cmpi eq, %arg0, %c0_i32 : i32
    %1 = arith.extui %0 : i1 to i32
    %c0_i32_0 = arith.constant 0 : i32
    %2 = arith.cmpi ne, %1, %c0_i32_0 : i32
    scf.if %2 {
      %c0_32 = arith.constant 0 : index
      %c0_33 = arith.constant 0 : index
      %33 = vector.load %arg2[%c0_32, %c0_33] : memref<8x128xf32, #tpu.memory_space<vmem>>, vector<8x128xf32>
      %c0_34 = arith.constant 0 : index
      %c0_35 = arith.constant 0 : index
      %34 = vector.load %arg8[%c0_34, %c0_35] : memref<8x128xf32, #tpu.memory_space<vmem>>, vector<8x128xf32>
      tpu.vector_store %arg8[%c0_34, %c0_35], %33 {strides = array<i32>} : memref<8x128xf32, #tpu.memory_space<vmem>>, vector<8x128xf32>,
      %c0_36 = arith.constant 0 : index
      %c0_37 = arith.constant 0 : index
      %35 = vector.load %arg3[%c0_36, %c0_37] : memref<8x128xf32, #tpu.memory_space<vmem>>, vector<8x128xf32>
      %c0_38 = arith.constant 0 : index
      %c0_39 = arith.constant 0 : index
      %36 = vector.load %arg9[%c0_38, %c0_39] : memref<8x128xf32, #tpu.memory_space<vmem>>, vector<8x128xf32>
      tpu.vector_store %arg9[%c0_38, %c0_39], %35 {strides = array<i32>} : memref<8x128xf32, #tpu.memory_space<vmem>>, vector<8x128xf32>,
      %c0_40 = arith.constant 0 : index
      %c0_41 = arith.constant 0 : index
      %37 = vector.load %arg4[%c0_40, %c0_41] : memref<8x128xf32, #tpu.memory_space<vmem>>, vector<8x128xf32>
      %c0_42 = arith.constant 0 : index
      %c0_43 = arith.constant 0 : index
      %38 = vector.load %arg10[%c0_42, %c0_43] : memref<8x128xf32, #tpu.memory_space<vmem>>, vector<8x128xf32>
      tpu.vector_store %arg10[%c0_42, %c0_43], %37 {strides = array<i32>} : memref<8x128xf32, #tpu.memory_space<vmem>>, vector<8x128xf32>,
    } else {
    }
    %c0 = arith.constant 0 : index
    %c0_1 = arith.constant 0 : index
    %3 = vector.load %arg8[%c0, %c0_1] : memref<8x128xf32, #tpu.memory_space<vmem>>, vector<8x128xf32>
    %c0_2 = arith.constant 0 : index
    %c0_3 = arith.constant 0 : index
    %4 = vector.load %arg9[%c0_2, %c0_3] : memref<8x128xf32, #tpu.memory_space<vmem>>, vector<8x128xf32>
    %c0_4 = arith.constant 0 : index
    %c0_5 = arith.constant 0 : index
    %5 = vector.load %arg10[%c0_4, %c0_5] : memref<8x128xf32, #tpu.memory_space<vmem>>, vector<8x128xf32>
    %c0_6 = arith.constant 0 : index
    %c0_7 = arith.constant 0 : index
    %6 = vector.load %arg6[%c0_6, %c0_7] : memref<128x128xf32, #tpu.memory_space<vmem>>, vector<128x128xf32>
    %cst = arith.constant dense<0.000000e+00> : vector<8x128xf32>
    %7 = tpu.matmul %4, %6, %cst {dimension_numbers = #tpu.dot_dimension_numbers<[1], [0], [0], [1], [0, 0, 1, 1], [], []>} : vector<8x128xf32>, vector<128x128xf32>, vector<8x128xf32> -> vector<8x128xf32>
    %cst_8 = arith.constant 1.000000e-01 : f32
    %8 = vector.broadcast %cst_8 : f32 to vector<8x128xf32>
    %9 = arith.mulf %8, %5 : vector<8x128xf32>
    %10 = arith.addf %7, %9 : vector<8x128xf32>
    %cst_9 = arith.constant 1.000000e+00 : f32
    %11 = vector.broadcast %cst_9 : f32 to vector<8x128xf32>
    %12 = arith.cmpf ogt, %10, %11 : vector<8x128xf32>
    %13 = arith.extui %12 : vector<8x128xi1> to vector<8x128xi32>
    %14 = arith.sitofp %13 : vector<8x128xi32> to vector<8x128xf32>
    %cst_10 = arith.constant 0.000000e+00 : f32
    %15 = vector.broadcast %cst_10 : f32 to vector<8x128xf32>
    %16 = arith.select %12, %15, %10 : vector<8x128xi1>, vector<8x128xf32>
    %c0_11 = arith.constant 0 : index
    %c0_12 = arith.constant 0 : index
    %c0_13 = arith.constant 0 : index
    %17 = vector.load %arg1[%c0_11, %c0_12, %c0_13] : memref<1x8x128xf32, #tpu.memory_space<vmem>>, vector<1x8x128xf32>
    %18 = vector.shape_cast %17 : vector<1x8x128xf32> to vector<8x128xf32>
    %c0_14 = arith.constant 0 : index
    %c0_15 = arith.constant 0 : index
    %19 = vector.load %arg11[%c0_14, %c0_15] : memref<8x256xf32, #tpu.memory_space<vmem>>, vector<8x128xf32>
    tpu.vector_store %arg11[%c0_14, %c0_15], %18 {strides = array<i32>} : memref<8x256xf32, #tpu.memory_space<vmem>>, vector<8x128xf32>,
    %c0_16 = arith.constant 0 : index
    %c128 = arith.constant 128 : index
    %20 = vector.load %arg11[%c0_16, %c128] : memref<8x256xf32, #tpu.memory_space<vmem>>, vector<8x128xf32>
    tpu.vector_store %arg11[%c0_16, %c128], %3 {strides = array<i32>} : memref<8x256xf32, #tpu.memory_space<vmem>>, vector<8x128xf32>,
    %cst_17 = arith.constant 8.000000e-01 : f32
    %21 = vector.broadcast %cst_17 : f32 to vector<8x128xf32>
    %22 = arith.mulf %21, %5 : vector<8x128xf32>
    %c0_18 = arith.constant 0 : index
    %c0_19 = arith.constant 0 : index
    %23 = vector.load %arg11[%c0_18, %c0_19] : memref<8x256xf32, #tpu.memory_space<vmem>>, vector<8x256xf32>
    %c0_20 = arith.constant 0 : index
    %c0_21 = arith.constant 0 : index
    %24 = vector.load %arg5[%c0_20, %c0_21] : memref<256x128xf32, #tpu.memory_space<vmem>>, vector<256x128xf32>
    %cst_22 = arith.constant dense<0.000000e+00> : vector<8x128xf32>
    %25 = tpu.matmul %23, %24, %cst_22 {dimension_numbers = #tpu.dot_dimension_numbers<[1], [0], [0], [1], [0, 0, 1, 1], [], []>} : vector<8x256xf32>, vector<256x128xf32>, vector<8x128xf32> -> vector<8x128xf32>
    %26 = arith.addf %22, %25 : vector<8x128xf32>
    %c0_23 = arith.constant 0 : index
    %c0_24 = arith.constant 0 : index
    %c0_25 = arith.constant 0 : index
    %27 = vector.load %arg7[%c0_23, %c0_24, %c0_25] : memref<1x8x128xf32, #tpu.memory_space<vmem>>, vector<1x8x128xf32>
    %28 = vector.shape_cast %27 : vector<1x8x128xf32> to vector<8x128xf32>
    %29 = vector.shape_cast %14 : vector<8x128xf32> to vector<1x8x128xf32>
    tpu.vector_store %arg7[%c0_23, %c0_24, %c0_25], %29 {strides = array<i32>} : memref<1x8x128xf32, #tpu.memory_space<vmem>>, vector<1x8x128xf32>,
    %c0_26 = arith.constant 0 : index
    %c0_27 = arith.constant 0 : index
    %30 = vector.load %arg8[%c0_26, %c0_27] : memref<8x128xf32, #tpu.memory_space<vmem>>, vector<8x128xf32>
    tpu.vector_store %arg8[%c0_26, %c0_27], %14 {strides = array<i32>} : memref<8x128xf32, #tpu.memory_space<vmem>>, vector<8x128xf32>,
    %c0_28 = arith.constant 0 : index
    %c0_29 = arith.constant 0 : index
    %31 = vector.load %arg9[%c0_28, %c0_29] : memref<8x128xf32, #tpu.memory_space<vmem>>, vector<8x128xf32>
    tpu.vector_store %arg9[%c0_28, %c0_29], %16 {strides = array<i32>} : memref<8x128xf32, #tpu.memory_space<vmem>>, vector<8x128xf32>,
    %c0_30 = arith.constant 0 : index
    %c0_31 = arith.constant 0 : index
    %32 = vector.load %arg10[%c0_30, %c0_31] : memref<8x128xf32, #tpu.memory_space<vmem>>, vector<8x128xf32>
    tpu.vector_store %arg10[%c0_30, %c0_31], %26 {strides = array<i32>} : memref<8x128xf32, #tpu.memory_space<vmem>>, vector<8x128xf32>,
    return
  }
  func.func @transform_0(%arg0: i32) -> (i32, i32, i32) {
    %c0_i32 = arith.constant 0 : i32
    %c0_i32_0 = arith.constant 0 : i32
    %c0_i32_1 = arith.constant 0 : i32
    return %arg0, %c0_i32, %c0_i32_0 : i32, i32, i32
  }
  func.func @transform_1(%arg0: i32) -> (i32, i32) {
    %c0_i32 = arith.constant 0 : i32
    %c0_i32_0 = arith.constant 0 : i32
    %c0_i32_1 = arith.constant 0 : i32
    return %c0_i32, %c0_i32_0 : i32, i32
  }
  func.func @transform_2(%arg0: i32) -> (i32, i32) {
    %c0_i32 = arith.constant 0 : i32
    %c0_i32_0 = arith.constant 0 : i32
    %c0_i32_1 = arith.constant 0 : i32
    return %c0_i32, %c0_i32_0 : i32, i32
  }
  func.func @transform_3(%arg0: i32) -> (i32, i32) {
    %c0_i32 = arith.constant 0 : i32
    %c0_i32_0 = arith.constant 0 : i32
    %c0_i32_1 = arith.constant 0 : i32
    return %c0_i32, %c0_i32_0 : i32, i32
  }
  func.func @transform_4(%arg0: i32) -> (i32, i32) {
    %c0_i32 = arith.constant 0 : i32
    %c0_i32_0 = arith.constant 0 : i32
    %c0_i32_1 = arith.constant 0 : i32
    return %c0_i32, %c0_i32_0 : i32, i32
  }
  func.func @transform_5(%arg0: i32) -> (i32, i32) {
    %c0_i32 = arith.constant 0 : i32
    %c0_i32_0 = arith.constant 0 : i32
    %c0_i32_1 = arith.constant 0 : i32
    return %c0_i32, %c0_i32_0 : i32, i32
  }
  func.func @transform_6(%arg0: i32) -> (i32, i32, i32) {
    %c0_i32 = arith.constant 0 : i32
    %c0_i32_0 = arith.constant 0 : i32
    %c0_i32_1 = arith.constant 0 : i32
    return %arg0, %c0_i32, %c0_i32_0 : i32, i32, i32
  }
  func.func @transform_7(%arg0: i32) -> (i32, i32) {
    %c0_i32 = arith.constant 0 : i32
    %c0_i32_0 = arith.constant 0 : i32
    %c0_i32_1 = arith.constant 0 : i32
    return %c0_i32, %c0_i32_0 : i32, i32
  }
  func.func @transform_8(%arg0: i32) -> (i32, i32) {
    %c0_i32 = arith.constant 0 : i32
    %c0_i32_0 = arith.constant 0 : i32
    %c0_i32_1 = arith.constant 0 : i32
    return %c0_i32, %c0_i32_0 : i32, i32
  }
  func.func @transform_9(%arg0: i32) -> (i32, i32) {
    %c0_i32 = arith.constant 0 : i32
    %c0_i32_0 = arith.constant 0 : i32
    %c0_i32_1 = arith.constant 0 : i32
    return %c0_i32, %c0_i32_0 : i32, i32
  }
}

</mosaic_0001>

<bundles_post_ra>
// kernel: tpu_custom_call.1
= control target key start
LH: loop header
LB: loop body
LE: loop exit
PB: predicated region body
PF: predicated region fallthrough
CT: control target
= control target key end

     0   :  { %15 = vsyncpa [#allocation4], 0  ;;  %s686_s0 = inlined_call_operand.hbm [shape: f32[1,8,128], index: 0, kind: input, shape index: {}]   ;;  %s687_s1 = inlined_call_operand.hbm [shape: f32[8,128], index: 1, kind: input, shape index: {}]   ;;  %s688_s2 = inlined_call_operand.hbm [shape: f32[8,128], index: 2, kind: input, shape index: {}]   ;;  %s689_s3 = inlined_call_operand.hbm [shape: f32[8,128], index: 3, kind: input, shape index: {}]   ;;  %s690_s4 = inlined_call_operand.hbm [shape: f32[256,128], index: 4, kind: input, shape index: {}]   ;;  %s691_s5 = inlined_call_operand.hbm [shape: f32[128,128], index: 5, kind: input, shape index: {}]   ;;  %s692_s6 = inlined_call_operand.hbm [shape: f32[1,8,128], index: 6, kind: output, shape index: {0}]   ;;  %s693_s7 = inlined_call_operand.hbm [shape: f32[8,128], index: 7, kind: output, shape index: {1}]   ;;  %s694_s8 = inlined_call_operand.hbm [shape: f32[8,128], index: 8, kind: output, shape index: {2}]   ;;  %s695_s9 = inlined_call_operand.hbm [shape: f32[8,128], index: 9, kind: output, shape index: {3}]  }
   0x1   :  { %16 = vsyncpa [#allocation7], 0 }
   0x2   :  { %17 = vsyncpa [#allocation10], 0 }
   0x3   :  { %18 = vsyncpa [#allocation13], 0 }
   0x4   :  { %19 = vsyncpa [#allocation5], 0 }
   0x5   :  { %20 = vsyncpa [#allocation16], 0  ;;  %s38_s11 = sshll.u32 %s687_s1, 4  ;;  %s39_s11 = int_to_ptr.hbm [resolvable:$true] %s38_s11 }
   0x6   :  { %21 = vsyncpa [#allocation19], 0  ;;  %s588_s12 = smov [#allocation6]   ;;  %s60_s16 = sshll.u32 %s689_s3, 4  ;;  %s61_s16 = int_to_ptr.hbm [resolvable:$true] %s60_s16 }
   0x7   :  { %s40_s13 = sshll.u32 %s588_s12, 4  ;;  %s589_s17 = smov [#allocation9]   ;;  %s41_s13 = int_to_ptr.vmem [resolvable:$true] %s40_s13 }
   0x8   :  { %43 = dma.hbm_to_vmem [thread:$0]  %s39_s11, 128, %s41_s13, [#allocation7]  }
   0x9   :  { %s62_s18 = sshll.u32 %s589_s17, 4  ;;  %s27_s21 = sshll.u32 %s686_s0, 4  ;;  %s63_s18 = int_to_ptr.vmem [resolvable:$true] %s62_s18  ;;  %s28_s21 = int_to_ptr.hbm [resolvable:$true] %s27_s21 }
   0xa   :  { %65 = dma.hbm_to_vmem [thread:$0]  %s61_s16, 128, %s63_s18, [#allocation10]  }
   0xb   :  { %s49_s23 = sshll.u32 %s688_s2, 4  ;;  %s590_s24 = smov [#allocation3]   ;;  %s50_s23 = int_to_ptr.hbm [resolvable:$true] %s49_s23 }
   0xc   :  { %s29_s25 = sshll.u32 %s590_s24, 4  ;;  %s591_s3 = smov [#allocation8]   ;;  %s30_s25 = int_to_ptr.vmem [resolvable:$true] %s29_s25 }
   0xd   :  { %32 = dma.hbm_to_vmem [thread:$0]  %s28_s21, 128, %s30_s25, [#allocation4]  }
   0xe   :  { %s51_s26 = sshll.u32 %s591_s3, 4  ;;  %s70_s29 = sshll.u32 %s690_s4, 4  ;;  %s52_s26 = int_to_ptr.vmem [resolvable:$true] %s51_s26  ;;  %s71_s29 = int_to_ptr.hbm [resolvable:$true] %s70_s29 }
   0xf   :  { %54 = dma.hbm_to_vmem [thread:$0]  %s50_s23, 128, %s52_s26, [#allocation7]  }
  0x10   :  { %s592_s0 = smov [#allocation11]   ;;  %s83_s2 = sshll.u32 %s691_s5, 4  ;;  %s84_s2 = int_to_ptr.hbm [resolvable:$true] %s83_s2 }
  0x11   :  { %s72_s30 = sshll.u32 %s592_s0, 4  ;;  %s593_s12 = smov 128   ;;  %s73_s30 = int_to_ptr.vmem [resolvable:$true] %s72_s30 }
  0x12   :  { %s594_s13 = smov 8   ;;  %s595_s14 = smov [#allocation12]  }
  0x13   :  { %78 = dma.hbm_to_vmem [thread:$0]  %s71_s29, 4096, %s73_s30, [#allocation10], %s593_s12, %s593_s12, %s594_s13  }
  0x14   :  { %s85_s15 = sshll.u32 %s595_s14, 4  ;;  %s86_s15 = int_to_ptr.vmem [resolvable:$true] %s85_s15 }
  0x15   :  { %91 = dma.hbm_to_vmem [thread:$0]  %s84_s2, 2048, %s86_s15, [#allocation13], %s593_s12, %s593_s12, %s594_s13  }
  0x16   :  { %574 = dma.done.wait [#allocation4], 128  }
  0x17   :  { %575 = vsyncadd [#allocation4], 4294967168 }
  0x18   :  { %576 = dma.done.wait [#allocation7], 256  }
  0x19   :  { %577 = vsyncadd [#allocation7], 4294967040 }
  0x1a   :  { %578 = dma.done.wait [#allocation10], 4224  }
  0x1b   :  { %579 = vsyncadd [#allocation10], 4294963072 }
  0x1c   :  { %580 = dma.done.wait [#allocation13], 2048  }
  0x1d   :  { %581 = vsyncadd [#allocation13], 4294965248  ;;  %v207_v0 = vld [vmem:[#allocation11 + $0xf8] sm:$0xff]  ;;  %v206_v1 = vld [vmem:[#allocation11 + $0xf0] sm:$0xff]  ;;  %s596_s4 = smov [#allocation15]   ;;  %s271_s18 = sshll.u32 %s693_s7, 4  ;;  %s272_s18 = int_to_ptr.hbm [resolvable:$true] %s271_s18 }
  0x1e   :  { %v144_v2 = vld [vmem:[#allocation12 + $0x78] sm:$0xff]  ;;  %228 = vmatpush.msra.mxu2 %v207_v0  ;;  %v143_v3 = vld [vmem:[#allocation12 + $0x70] sm:$0xff]  ;;  %v205_v5 = vld [vmem:[#allocation11 + $0xe8] sm:$0xff]  ;;  %s669_s5 = sshll.u32 %s596_s4, 4  ;;  %s597_s19 = smov [#allocation14]   ;;  %v599_v55 = vmov 0.0   ;;  %s270_s5 = int_to_ptr.vmem [resolvable:$true] %s669_s5 }
  0x1f   :  { %146 = vmatpush.msra.mxu0 %v144_v2  ;;  %v191_v4 = vld [vmem:[#allocation11 + $0x78] sm:$0xff]  ;;  %v142_v6 = vld [vmem:[#allocation12 + $0x68] sm:$0xff]  ;;  %v190_v7 = vld [vmem:[#allocation11 + $0x70] sm:$0xff]  ;;  %s258_s20 = sshll.u32 %s597_s19, 4  ;;  %s260_s22 = sshll.u32 %s692_s6, 4  ;;  %s259_s20 = int_to_ptr.vmem [resolvable:$true] %s258_s20  ;;  %s261_s22 = int_to_ptr.hbm [resolvable:$true] %s260_s22 }
  0x20   :  { %208 = vmatpush.msra.mxu1 %v191_v4  ;;  %229 = vmatpush.msra.mxu2 %v206_v1  ;;  %v189_v8 = vld [vmem:[#allocation11 + $0x68] sm:$0xff]  ;;  %v204_v9 = vld [vmem:[#allocation11 + $0xe0] sm:$0xff]  ;;  %v203_v12 = vld [vmem:[#allocation11 + $0xd8] sm:$0xff]  ;;  %s598_s23 = smov [#allocation17]   ;;  %s282_s26 = sshll.u32 %s694_s8, 4  ;;  %s283_s26 = int_to_ptr.hbm [resolvable:$true] %s282_s26 }
  0x21   :  { %147 = vmatpush.msra.mxu0 %v143_v3  ;;  %v141_v10 = vld [vmem:[#allocation12 + $0x60] sm:$0xff]  ;;  %v140_v13 = vld [vmem:[#allocation12 + $0x58] sm:$0xff]  ;;  %v202_v15 = vld [vmem:[#allocation11 + $0xd0] sm:$0xff]  ;;  %s280_s24 = sshll.u32 %s598_s23, 4  ;;  %s600_s6 = smov [#allocation18]   ;;  %s281_s24 = int_to_ptr.vmem [resolvable:$true] %s280_s24 }
  0x22   :  { %209 = vmatpush.msra.mxu1 %v190_v7  ;;  %230 = vmatpush.msra.mxu2 %v205_v5  ;;  %v188_v11 = vld [vmem:[#allocation11 + $0x60] sm:$0xff]  ;;  %v187_v14 = vld [vmem:[#allocation11 + $0x58] sm:$0xff]  ;;  %v139_v16 = vld [vmem:[#allocation12 + $0x50] sm:$0xff]  ;;  %s291_s7 = sshll.u32 %s600_s6, 4  ;;  %s293_s29 = sshll.u32 %s695_s9, 4  ;;  %s292_s7 = int_to_ptr.vmem [resolvable:$true] %s291_s7  ;;  %s294_s29 = int_to_ptr.hbm [resolvable:$true] %s293_s29 }
  0x23   :  { %148 = vmatpush.msra.mxu0 %v142_v6  ;;  %v186_v17 = vld [vmem:[#allocation11 + $0x50] sm:$0xff]  ;;  %v201_v18 = vld [vmem:[#allocation11 + $0xc8] sm:$0xff]  ;;  %v200_v21 = vld [vmem:[#allocation11 + $0xc0] sm:$0xff] }
  0x24   :  { %210 = vmatpush.msra.mxu1 %v189_v8  ;;  %231 = vmatpush.msra.mxu2 %v204_v9  ;;  %v138_v19 = vld [vmem:[#allocation12 + $0x48] sm:$0xff]  ;;  %v137_v22 = vld [vmem:[#allocation12 + $0x40] sm:$0xff]  ;;  %v199_v24 = vld [vmem:[#allocation11 + $0xb8] sm:$0xff] }
  0x25   :  { %149 = vmatpush.msra.mxu0 %v141_v10  ;;  %v185_v20 = vld [vmem:[#allocation11 + $0x48] sm:$0xff]  ;;  %v184_v23 = vld [vmem:[#allocation11 + $0x40] sm:$0xff]  ;;  %v136_v25 = vld [vmem:[#allocation12 + $0x38] sm:$0xff] }
  0x26   :  { %211 = vmatpush.msra.mxu1 %v188_v11  ;;  %232 = vmatpush.msra.mxu2 %v203_v12  ;;  %v183_v26 = vld [vmem:[#allocation11 + $0x38] sm:$0xff]  ;;  %v198_v27 = vld [vmem:[#allocation11 + $0xb0] sm:$0xff]  ;;  %v197_v30 = vld [vmem:[#allocation11 + $0xa8] sm:$0xff] }
  0x27   :  { %150 = vmatpush.msra.mxu0 %v140_v13  ;;  %v135_v28 = vld [vmem:[#allocation12 + $0x30] sm:$0xff]  ;;  %v134_v31 = vld [vmem:[#allocation12 + $0x28] sm:$0xff]  ;;  %v196_v33 = vld [vmem:[#allocation11 + $0xa0] sm:$0xff] }
  0x28   :  { %212 = vmatpush.msra.mxu1 %v187_v14  ;;  %233 = vmatpush.msra.mxu2 %v202_v15  ;;  %v182_v29 = vld [vmem:[#allocation11 + $0x30] sm:$0xff]  ;;  %v181_v32 = vld [vmem:[#allocation11 + $0x28] sm:$0xff]  ;;  %v133_v34 = vld [vmem:[#allocation12 + $0x20] sm:$0xff] }
  0x29   :  { %151 = vmatpush.msra.mxu0 %v139_v16  ;;  %v180_v35 = vld [vmem:[#allocation11 + $0x20] sm:$0xff]  ;;  %v195_v36 = vld [vmem:[#allocation11 + $0x98] sm:$0xff]  ;;  %v194_v39 = vld [vmem:[#allocation11 + $0x90] sm:$0xff] }
  0x2a   :  { %213 = vmatpush.msra.mxu1 %v186_v17  ;;  %234 = vmatpush.msra.mxu2 %v201_v18  ;;  %v132_v37 = vld [vmem:[#allocation12 + $0x18] sm:$0xff]  ;;  %v131_v40 = vld [vmem:[#allocation12 + $0x10] sm:$0xff]  ;;  %v193_v42 = vld [vmem:[#allocation11 + $0x88] sm:$0xff] }
  0x2b   :  { %152 = vmatpush.msra.mxu0 %v138_v19  ;;  %v179_v38 = vld [vmem:[#allocation11 + $0x18] sm:$0xff]  ;;  %v178_v41 = vld [vmem:[#allocation11 + $0x10] sm:$0xff]  ;;  %v130_v43 = vld [vmem:[#allocation12 + $0x8] sm:$0xff] }
  0x2c   :  { %214 = vmatpush.msra.mxu1 %v185_v20  ;;  %235 = vmatpush.msra.mxu2 %v200_v21  ;;  %v177_v44 = vld [vmem:[#allocation11 + $0x8] sm:$0xff]  ;;  %v192_v45 = vld [vmem:[#allocation11 + $0x80] sm:$0xff]  ;;  %v122_v48 = vld [vmem:[#allocation8] sm:$0xff] }
  0x2d   :  { %153 = vmatpush.msra.mxu0 %v137_v22  ;;  %v129_v46 = vld [vmem:[#allocation12] sm:$0xff]  ;;  %v120_v47 = vld [vmem:[#allocation6] sm:$0xff]  ;;  %v124_v51 = vld [vmem:[#allocation9] sm:$0xff] }
  0x2e   :  { %215 = vmatpush.msra.mxu1 %v184_v23  ;;  %236 = vmatpush.msra.mxu2 %v199_v24  ;;  %v176_v49 = vld [vmem:[#allocation11] sm:$0xff]  ;;  %v145_v52 = vmul.f32 0.1, %v124_v51  ;;  %v173_v59 = vmul.f32 0.8, %v124_v51 }
  0x2f   :  { %154 = vmatpush.msra.mxu0 %v136_v25  ;;  %v170_v50 = vld [vmem:[#allocation3] sm:$0xff] }
  0x30   :  { %216 = vmatpush.msra.mxu1 %v183_v26  ;;  %237 = vmatpush.msra.mxu2 %v198_v27 }
  0x31   :  { %155 = vmatpush.msra.mxu0 %v135_v28 }
  0x32   :  { %217 = vmatpush.msra.mxu1 %v182_v29  ;;  %238 = vmatpush.msra.mxu2 %v197_v30 }
  0x33   :  { %156 = vmatpush.msra.mxu0 %v134_v31 }
  0x34   :  { %218 = vmatpush.msra.mxu1 %v181_v32  ;;  %239 = vmatpush.msra.mxu2 %v196_v33 }
  0x35   :  { %157 = vmatpush.msra.mxu0 %v133_v34 }
  0x36   :  { %219 = vmatpush.msra.mxu1 %v180_v35  ;;  %240 = vmatpush.msra.mxu2 %v195_v36 }
  0x37   :  { %158 = vmatpush.msra.mxu0 %v132_v37 }
  0x38   :  { %220 = vmatpush.msra.mxu1 %v179_v38  ;;  %241 = vmatpush.msra.mxu2 %v194_v39 }
  0x39   :  { %159 = vmatpush.msra.mxu0 %v131_v40 }
  0x3a   :  { %221 = vmatpush.msra.mxu1 %v178_v41  ;;  %242 = vmatpush.msra.mxu2 %v193_v42 }
  0x3b   :  { %160 = vmatpush.msra.mxu0 %v130_v43 }
  0x3c   :  { %222 = vmatpush.msra.mxu1 %v177_v44  ;;  %243 = vmatpush.msra.mxu2 %v192_v45 }
  0x3d   :  { %161 = vmatpush.msra.mxu0 %v129_v46  ;;  %244 = vmatmul.f32.vlgmr.msra.gmra.mxu2 %v120_v47 }
  0x3e   :  { %162 = vmatmul.f32.vlgmr.msra.gmra.mxu0 %v122_v48  ;;  %223 = vmatpush.msra.mxu1 %v176_v49 }
  0x3f   :  { %224 = vmatmul.f32.vlgmr.msra.gmra.mxu1 %v170_v50 }
  0xbb   :  { %v163_v53 = vpop.f32.mrf.mxu0 }
  0xbc   :  { %v164_v54 = vadd.f32 %v163_v53, %v145_v52  ;;  %v225_v58 = vpop.f32.mrf.mxu1 }
  0xbe   :  { %vm166_vm0 = vcmp.gt.f32.partialorder %v164_v54, 1.0 }
  0xbf   :  { %v320_v56 = vsel %vm166_vm0, 1.0, %v599_v55  ;;  %v169_v57 = vsel %vm166_vm0, 0.0, %v164_v54 }
  0xc0   :  { %249 = vst [vmem:[#allocation14] sm:$0xff] %v320_v56  ;;  %v245_v60 = vpop.f32.mrf.mxu2 }
  0xc1   :  { %250 = vst [vmem:[#allocation15] sm:$0xff] %v320_v56  ;;  %263 = dma.vmem_to_hbm [thread:$0]  %s259_s20, 128, %s261_s22, [#allocation5]   ;;  %v246_v61 = vadd.f32 %v245_v60, %v225_v58 }
  0xc2   :  { %251 = vst [vmem:[#allocation17] sm:$0xff] %v169_v57  ;;  %274 = dma.vmem_to_hbm [thread:$0]  %s270_s5, 128, %s272_s18, [#allocation16]  }
  0xc3   :  { %285 = dma.vmem_to_hbm [thread:$0]  %s281_s24, 128, %s283_s26, [#allocation16]   ;;  %v248_v62 = vadd.f32 %v246_v61, %v173_v59 }
  0xc5   :  { %252 = vst [vmem:[#allocation18] sm:$0xff] %v248_v62 }
  0xc6   :  { %296 = dma.vmem_to_hbm [thread:$0]  %s292_s7, 128, %s294_s29, [#allocation19]  }
  0xc7   :  { %582 = dma.done.wait [#allocation5], 128  }
  0xc8   :  { %583 = vsyncadd [#allocation5], 4294967168 }
  0xc9   :  { %584 = dma.done.wait [#allocation16], 256  }
  0xca   :  { %585 = vsyncadd [#allocation16], 4294967040 }
  0xcb   :  { %586 = dma.done.wait [#allocation19], 128  }
  0xcc   :  { %587 = vsyncadd [#allocation19], 4294967168 }
  0xcd   :  { %313 = vsyncpa [#allocation4], 1 }
  0xce   :  { %314 = vsyncpa [#allocation7], 1 }
  0xcf   :  { %315 = vsyncpa [#allocation10], 1 }
  0xd0   :  { %316 = vsyncpa [#allocation13], 1 }
  0xd1   :  { %317 = vsyncpa [#allocation5], 1 }
  0xd2   :  { %318 = vsyncpa [#allocation16], 1 }
  0xd3   :  { %319 = vsyncpa [#allocation19], 1 }

</bundles_post_ra>
